<compile_context>
chip_gen: v5e
topology: v5e:2x2
jax: 0.10.0
libtpu: 0.0.40
codegen_flags: <defaults>
</compile_context>

<pallas_src>
import functools

import jax
import jax.numpy as jnp
from jax import lax
from jax.experimental import pallas as pl
from jax.experimental.pallas import tpu as pltpu


def _mha_kernel(x_ref, wk_ref, wq_ref, wv_ref, wp_ref, bp_ref, o_ref, *,
                num_heads, head_size, scale):
    # x_ref : (T, C)  one batch element (batch dim squeezed by the BlockSpec)
    # w*_ref: (C, C)  stacked per-head projection weights, pre-transposed so
    #                 the kernel computes x @ W; resident across grid steps
    # wp_ref: (C, C)  output projection W^T;  bp_ref: (1, C) projection bias
    # o_ref : (T, C)
    x = x_ref[...].astype(jnp.float32)
    T, C = x.shape

    # QKV projections for all heads at once -> MXU, f32 accumulation.
    k_all = jnp.dot(x, wk_ref[...], preferred_element_type=jnp.float32)
    q_all = jnp.dot(x, wq_ref[...], preferred_element_type=jnp.float32)
    v_all = jnp.dot(x, wv_ref[...], preferred_element_type=jnp.float32)

    # Causal mask (keep j <= i), built from iota instead of a DMA'd tril buffer.
    row = lax.broadcasted_iota(jnp.int32, (T, T), 0)   # i (k index)
    col = lax.broadcasted_iota(jnp.int32, (T, T), 1)   # j (q index)
    keep = col <= row
    neg_big = jnp.float32(-1e30)

    wp = wp_ref[...]                                   # loaded once per step
    bp = bp_ref[...].astype(jnp.float32)               # (1, C)

    # y = concat_h(out_h) @ Wp^T + bp == sum_h out_h @ Wp^T[hH:(h+1)H, :] + bp
    acc = jnp.zeros((T, C), jnp.float32)
    for h in range(num_heads):                         # static unroll (small)
        sl = slice(h * head_size, (h + 1) * head_size)
        kh = k_all[:, sl]
        qh = q_all[:, sl]
        vh = v_all[:, sl]

        # weights[i, j] = sum_d k[i, d] * q[j, d]   (k @ q^T, as in the module)
        w = lax.dot_general(kh, qh, (((1,), (1,)), ((), ())),
                            preferred_element_type=jnp.float32) * scale
        w = jnp.where(keep, w, neg_big)

        # softmax over dim=1 of (B, T, T)  ==  axis 0 of this (T, T) tile.
        m = jnp.max(w, axis=0, keepdims=True)
        p = jnp.exp(w - m)
        s = jnp.sum(p, axis=0, keepdims=True)
        p = p * pl.reciprocal(s, approx=True)          # EUP slot, frees VALU
        # TODO(synk): attention/output dropout treated as identity (eval mode).

        out_h = jnp.dot(p, vh, preferred_element_type=jnp.float32)      # (T, H)
        acc = acc + jnp.dot(out_h, wp[sl, :],
                            preferred_element_type=jnp.float32)

    o_ref[...] = (acc + bp).astype(o_ref.dtype)


def multi_head_attention(x, wk_t, wq_t, wv_t, wp_t, proj_b, *,
                         num_heads, head_size):
    """x: (B, T, C).  wk_t/wq_t/wv_t: (C, C) stacked per-head K/Q/V weights
    (transposed, head h occupies columns h*H:(h+1)*H).  wp_t: (C, C) output
    projection weight transposed.  proj_b: (C,)."""
    B, T, C = x.shape
    assert num_heads * head_size == C
    scale = float(C) ** 0.5

    kernel = functools.partial(_mha_kernel, num_heads=num_heads,
                               head_size=head_size, scale=scale)

    return pl.pallas_call(
        kernel,
        out_shape=jax.ShapeDtypeStruct((B, T, C), x.dtype),
        grid_spec=pltpu.PrefetchScalarGridSpec(
            num_scalar_prefetch=0,
            grid=(B,),
            in_specs=[
                pl.BlockSpec((None, T, C), lambda b: (b, 0, 0)),   # x[b]
                pl.BlockSpec((C, C), lambda b: (0, 0)),            # Wk^T (resident)
                pl.BlockSpec((C, C), lambda b: (0, 0)),            # Wq^T
                pl.BlockSpec((C, C), lambda b: (0, 0)),            # Wv^T
                pl.BlockSpec((C, C), lambda b: (0, 0)),            # Wp^T
                pl.BlockSpec((1, C), lambda b: (0, 0)),            # proj bias
            ],
            out_specs=pl.BlockSpec((None, T, C), lambda b: (b, 0, 0)),
        ),
        compiler_params=pltpu.CompilerParams(
            dimension_semantics=("parallel",),   # shard batch across TCs (v7x)
        ),
    )(x, wk_t, wq_t, wv_t, wp_t, proj_b.reshape(1, C))


def mha_ref(x, wk_t, wq_t, wv_t, wp_t, proj_b, *, num_heads, head_size):
    """Pure-JAX reference mirroring the PyTorch module exactly."""
    B, T, C = x.shape
    scale = float(C) ** 0.5
    k = x @ wk_t
    q = x @ wq_t
    v = x @ wv_t
    tril = jnp.tril(jnp.ones((T, T)))
    outs = []
    for h in range(num_heads):
        sl = slice(h * head_size, (h + 1) * head_size)
        kh, qh, vh = k[..., sl], q[..., sl], v[..., sl]
        w = jnp.einsum('bik,bjk->bij', kh, qh) * scale
        w = jnp.where(tril == 0, -jnp.inf, w)
        w = jax.nn.softmax(w, axis=1)            # softmax over dim=1, as in torch
        outs.append(jnp.einsum('bij,bjh->bih', w, vh))
    out = jnp.concatenate(outs, axis=-1)
    return out @ wp_t + proj_b


if __name__ == "__main__":
    key = jax.random.PRNGKey(0)
    batch, block_size, n_embd, num_heads = 2, 8, 32, 4
    head_size = n_embd // num_heads               # 8;  dropout = 0.0 (eval)

    ks = jax.random.split(key, 6)
    init = 1.0 / (n_embd ** 0.5)
    x = jax.random.normal(ks[0], (batch, block_size, n_embd), dtype=jnp.float32)
    # Per-head Linear(n_embd, head_size, bias=False) weights, stacked along the
    # output axis and pre-transposed so the kernel computes x @ W.
    wk_t = jax.random.uniform(ks[1], (n_embd, n_embd), jnp.float32, -init, init)
    wq_t = jax.random.uniform(ks[2], (n_embd, n_embd), jnp.float32, -init, init)
    wv_t = jax.random.uniform(ks[3], (n_embd, n_embd), jnp.float32, -init, init)
    wp_t = jax.random.uniform(ks[4], (n_embd, n_embd), jnp.float32, -init, init)
    proj_b = jax.random.uniform(ks[5], (n_embd,), jnp.float32, -init, init)

    out = multi_head_attention(x, wk_t, wq_t, wv_t, wp_t, proj_b,
                               num_heads=num_heads, head_size=head_size)
    out = jax.block_until_ready(out)

    ref = mha_ref(x, wk_t, wq_t, wv_t, wp_t, proj_b,
                  num_heads=num_heads, head_size=head_size)
    assert out.shape == (batch, block_size, n_embd)
    max_err = float(jnp.max(jnp.abs(out - ref)))
    assert jnp.allclose(out, ref, atol=2e-3, rtol=2e-3), max_err

    print("KERNEL_OK")
</pallas_src>

<mosaic_0001>
module attributes {stable_mosaic.version = 11 : i64} {
  func.func @_mha_kernel(%arg0: i32, %arg1: memref<1x8x32xf32, #tpu.memory_space<vmem>>, %arg2: memref<32x32xf32, #tpu.memory_space<vmem>>, %arg3: memref<32x32xf32, #tpu.memory_space<vmem>>, %arg4: memref<32x32xf32, #tpu.memory_space<vmem>>, %arg5: memref<32x32xf32, #tpu.memory_space<vmem>>, %arg6: memref<1x32xf32, #tpu.memory_space<vmem>>, %arg7: memref<1x8x32xf32, #tpu.memory_space<vmem>>) attributes {dimension_semantics = [#tpu.dimension_semantics<parallel>], iteration_bounds = array<i64: 2>, scalar_prefetch = 0 : i64, scratch_operands = 0 : i64, tpu.core_type = #tpu.core_type<tc>, window_params = [{transform_indices = @transform_0, window_bounds = array<i64: 1, 8, 32>}, {pipeline_mode = #tpu.pipeline_mode<synchronous>, transform_indices = @transform_1, window_bounds = array<i64: 32, 32>}, {pipeline_mode = #tpu.pipeline_mode<synchronous>, transform_indices = @transform_2, window_bounds = array<i64: 32, 32>}, {pipeline_mode = #tpu.pipeline_mode<synchronous>, transform_indices = @transform_3, window_bounds = array<i64: 32, 32>}, {pipeline_mode = #tpu.pipeline_mode<synchronous>, transform_indices = @transform_4, window_bounds = array<i64: 32, 32>}, {pipeline_mode = #tpu.pipeline_mode<synchronous>, transform_indices = @transform_5, window_bounds = array<i64: 1, 32>}, {transform_indices = @transform_6, window_bounds = array<i64: 1, 8, 32>}]} {
    %c0 = arith.constant 0 : index
    %c0_0 = arith.constant 0 : index
    %c0_1 = arith.constant 0 : index
    %0 = vector.load %arg1[%c0, %c0_0, %c0_1] : memref<1x8x32xf32, #tpu.memory_space<vmem>>, vector<1x8x32xf32>
    %1 = vector.shape_cast %0 : vector<1x8x32xf32> to vector<8x32xf32>
    %c0_2 = arith.constant 0 : index
    %c0_3 = arith.constant 0 : index
    %2 = vector.load %arg2[%c0_2, %c0_3] : memref<32x32xf32, #tpu.memory_space<vmem>>, vector<32x32xf32>
    %cst = arith.constant dense<0.000000e+00> : vector<8x32xf32>
    %3 = tpu.matmul %1, %2, %cst {dimension_numbers = #tpu.dot_dimension_numbers<[1], [0], [0], [1], [0, 0, 1, 1], [], []>} : vector<8x32xf32>, vector<32x32xf32>, vector<8x32xf32> -> vector<8x32xf32>
    %c0_4 = arith.constant 0 : index
    %c0_5 = arith.constant 0 : index
    %4 = vector.load %arg3[%c0_4, %c0_5] : memref<32x32xf32, #tpu.memory_space<vmem>>, vector<32x32xf32>
    %cst_6 = arith.constant dense<0.000000e+00> : vector<8x32xf32>
    %5 = tpu.matmul %1, %4, %cst_6 {dimension_numbers = #tpu.dot_dimension_numbers<[1], [0], [0], [1], [0, 0, 1, 1], [], []>} : vector<8x32xf32>, vector<32x32xf32>, vector<8x32xf32> -> vector<8x32xf32>
    %c0_7 = arith.constant 0 : index
    %c0_8 = arith.constant 0 : index
    %6 = vector.load %arg4[%c0_7, %c0_8] : memref<32x32xf32, #tpu.memory_space<vmem>>, vector<32x32xf32>
    %cst_9 = arith.constant dense<0.000000e+00> : vector<8x32xf32>
    %7 = tpu.matmul %1, %6, %cst_9 {dimension_numbers = #tpu.dot_dimension_numbers<[1], [0], [0], [1], [0, 0, 1, 1], [], []>} : vector<8x32xf32>, vector<32x32xf32>, vector<8x32xf32> -> vector<8x32xf32>
    %8 = tpu.iota {dimensions = array<i32: 0>} : vector<8x8xi32>
    %9 = tpu.iota {dimensions = array<i32: 1>} : vector<8x8xi32>
    %10 = arith.cmpi sle, %9, %8 : vector<8x8xi32>
    %c0_10 = arith.constant 0 : index
    %c0_11 = arith.constant 0 : index
    %11 = vector.load %arg5[%c0_10, %c0_11] : memref<32x32xf32, #tpu.memory_space<vmem>>, vector<32x32xf32>
    %c0_12 = arith.constant 0 : index
    %c0_13 = arith.constant 0 : index
    %12 = vector.load %arg6[%c0_12, %c0_13] : memref<1x32xf32, #tpu.memory_space<vmem>>, vector<1x32xf32>
    %cst_14 = arith.constant 0.000000e+00 : f32
    %13 = vector.broadcast %cst_14 : f32 to vector<8x32xf32>
    %14 = vector.extract_strided_slice %3 {offsets = [0, 0], sizes = [8, 8], strides = [1, 1]} : vector<8x32xf32> to vector<8x8xf32>
    %15 = vector.extract_strided_slice %5 {offsets = [0, 0], sizes = [8, 8], strides = [1, 1]} : vector<8x32xf32> to vector<8x8xf32>
    %16 = vector.extract_strided_slice %7 {offsets = [0, 0], sizes = [8, 8], strides = [1, 1]} : vector<8x32xf32> to vector<8x8xf32>
    %cst_15 = arith.constant dense<0.000000e+00> : vector<8x8xf32>
    %17 = tpu.matmul %14, %15, %cst_15 {dimension_numbers = #tpu.dot_dimension_numbers<[1], [1], [0], [0], [0, 0, 1, 0], [], []>} : vector<8x8xf32>, vector<8x8xf32>, vector<8x8xf32> -> vector<8x8xf32>
    %cst_16 = arith.constant 5.65685415 : f32
    %18 = vector.broadcast %cst_16 : f32 to vector<8x8xf32>
    %19 = arith.mulf %17, %18 : vector<8x8xf32>
    %cst_17 = arith.constant -1.000000e+30 : f32
    %20 = vector.broadcast %cst_17 : f32 to vector<8x8xf32>
    %21 = arith.select %10, %19, %20 : vector<8x8xi1>, vector<8x8xf32>
    %cst_18 = arith.constant dense<0xFF800000> : vector<8xf32>
    %22 = vector.multi_reduction <maximumf>, %21, %cst_18 [0] : vector<8x8xf32> to vector<8xf32>
    %23 = vector.shape_cast %22 : vector<8xf32> to vector<1x8xf32>
    %24 = vector.broadcast %23 : vector<1x8xf32> to vector<8x8xf32>
    %25 = arith.subf %21, %24 : vector<8x8xf32>
    %26 = math.exp %25 : vector<8x8xf32>
    %cst_19 = arith.constant dense<0.000000e+00> : vector<8xf32>
    %27 = vector.multi_reduction <add>, %26, %cst_19 [0] : vector<8x8xf32> to vector<8xf32>
    %28 = vector.shape_cast %27 : vector<8xf32> to vector<1x8xf32>
    %29 = tpu.reciprocal %28 {approx = true} : vector<1x8xf32> -> vector<1x8xf32>
    %30 = vector.broadcast %29 : vector<1x8xf32> to vector<8x8xf32>
    %31 = arith.mulf %26, %30 : vector<8x8xf32>
    %cst_20 = arith.constant dense<0.000000e+00> : vector<8x8xf32>
    %32 = tpu.matmul %31, %16, %cst_20 {dimension_numbers = #tpu.dot_dimension_numbers<[1], [0], [0], [1], [0, 0, 1, 1], [], []>} : vector<8x8xf32>, vector<8x8xf32>, vector<8x8xf32> -> vector<8x8xf32>
    %33 = vector.extract_strided_slice %11 {offsets = [0, 0], sizes = [8, 32], strides = [1, 1]} : vector<32x32xf32> to vector<8x32xf32>
    %cst_21 = arith.constant dense<0.000000e+00> : vector<8x32xf32>
    %34 = tpu.matmul %32, %33, %cst_21 {dimension_numbers = #tpu.dot_dimension_numbers<[1], [0], [0], [1], [0, 0, 1, 1], [], []>} : vector<8x8xf32>, vector<8x32xf32>, vector<8x32xf32> -> vector<8x32xf32>
    %35 = arith.addf %13, %34 : vector<8x32xf32>
    %36 = vector.extract_strided_slice %3 {offsets = [0, 8], sizes = [8, 8], strides = [1, 1]} : vector<8x32xf32> to vector<8x8xf32>
    %37 = vector.extract_strided_slice %5 {offsets = [0, 8], sizes = [8, 8], strides = [1, 1]} : vector<8x32xf32> to vector<8x8xf32>
    %38 = vector.extract_strided_slice %7 {offsets = [0, 8], sizes = [8, 8], strides = [1, 1]} : vector<8x32xf32> to vector<8x8xf32>
    %cst_22 = arith.constant dense<0.000000e+00> : vector<8x8xf32>
    %39 = tpu.matmul %36, %37, %cst_22 {dimension_numbers = #tpu.dot_dimension_numbers<[1], [1], [0], [0], [0, 0, 1, 0], [], []>} : vector<8x8xf32>, vector<8x8xf32>, vector<8x8xf32> -> vector<8x8xf32>
    %cst_23 = arith.constant 5.65685415 : f32
    %40 = vector.broadcast %cst_23 : f32 to vector<8x8xf32>
    %41 = arith.mulf %39, %40 : vector<8x8xf32>
    %cst_24 = arith.constant -1.000000e+30 : f32
    %42 = vector.broadcast %cst_24 : f32 to vector<8x8xf32>
    %43 = arith.select %10, %41, %42 : vector<8x8xi1>, vector<8x8xf32>
    %cst_25 = arith.constant dense<0xFF800000> : vector<8xf32>
    %44 = vector.multi_reduction <maximumf>, %43, %cst_25 [0] : vector<8x8xf32> to vector<8xf32>
    %45 = vector.shape_cast %44 : vector<8xf32> to vector<1x8xf32>
    %46 = vector.broadcast %45 : vector<1x8xf32> to vector<8x8xf32>
    %47 = arith.subf %43, %46 : vector<8x8xf32>
    %48 = math.exp %47 : vector<8x8xf32>
    %cst_26 = arith.constant dense<0.000000e+00> : vector<8xf32>
    %49 = vector.multi_reduction <add>, %48, %cst_26 [0] : vector<8x8xf32> to vector<8xf32>
    %50 = vector.shape_cast %49 : vector<8xf32> to vector<1x8xf32>
    %51 = tpu.reciprocal %50 {approx = true} : vector<1x8xf32> -> vector<1x8xf32>
    %52 = vector.broadcast %51 : vector<1x8xf32> to vector<8x8xf32>
    %53 = arith.mulf %48, %52 : vector<8x8xf32>
    %cst_27 = arith.constant dense<0.000000e+00> : vector<8x8xf32>
    %54 = tpu.matmul %53, %38, %cst_27 {dimension_numbers = #tpu.dot_dimension_numbers<[1], [0], [0], [1], [0, 0, 1, 1], [], []>} : vector<8x8xf32>, vector<8x8xf32>, vector<8x8xf32> -> vector<8x8xf32>
    %55 = vector.extract_strided_slice %11 {offsets = [8, 0], sizes = [8, 32], strides = [1, 1]} : vector<32x32xf32> to vector<8x32xf32>
    %cst_28 = arith.constant dense<0.000000e+00> : vector<8x32xf32>
    %56 = tpu.matmul %54, %55, %cst_28 {dimension_numbers = #tpu.dot_dimension_numbers<[1], [0], [0], [1], [0, 0, 1, 1], [], []>} : vector<8x8xf32>, vector<8x32xf32>, vector<8x32xf32> -> vector<8x32xf32>
    %57 = arith.addf %35, %56 : vector<8x32xf32>
    %58 = vector.extract_strided_slice %3 {offsets = [0, 16], sizes = [8, 8], strides = [1, 1]} : vector<8x32xf32> to vector<8x8xf32>
    %59 = vector.extract_strided_slice %5 {offsets = [0, 16], sizes = [8, 8], strides = [1, 1]} : vector<8x32xf32> to vector<8x8xf32>
    %60 = vector.extract_strided_slice %7 {offsets = [0, 16], sizes = [8, 8], strides = [1, 1]} : vector<8x32xf32> to vector<8x8xf32>
    %cst_29 = arith.constant dense<0.000000e+00> : vector<8x8xf32>
    %61 = tpu.matmul %58, %59, %cst_29 {dimension_numbers = #tpu.dot_dimension_numbers<[1], [1], [0], [0], [0, 0, 1, 0], [], []>} : vector<8x8xf32>, vector<8x8xf32>, vector<8x8xf32> -> vector<8x8xf32>
    %cst_30 = arith.constant 5.65685415 : f32
    %62 = vector.broadcast %cst_30 : f32 to vector<8x8xf32>
    %63 = arith.mulf %61, %62 : vector<8x8xf32>
    %cst_31 = arith.constant -1.000000e+30 : f32
    %64 = vector.broadcast %cst_31 : f32 to vector<8x8xf32>
    %65 = arith.select %10, %63, %64 : vector<8x8xi1>, vector<8x8xf32>
    %cst_32 = arith.constant dense<0xFF800000> : vector<8xf32>
    %66 = vector.multi_reduction <maximumf>, %65, %cst_32 [0] : vector<8x8xf32> to vector<8xf32>
    %67 = vector.shape_cast %66 : vector<8xf32> to vector<1x8xf32>
    %68 = vector.broadcast %67 : vector<1x8xf32> to vector<8x8xf32>
    %69 = arith.subf %65, %68 : vector<8x8xf32>
    %70 = math.exp %69 : vector<8x8xf32>
    %cst_33 = arith.constant dense<0.000000e+00> : vector<8xf32>
    %71 = vector.multi_reduction <add>, %70, %cst_33 [0] : vector<8x8xf32> to vector<8xf32>
    %72 = vector.shape_cast %71 : vector<8xf32> to vector<1x8xf32>
    %73 = tpu.reciprocal %72 {approx = true} : vector<1x8xf32> -> vector<1x8xf32>
    %74 = vector.broadcast %73 : vector<1x8xf32> to vector<8x8xf32>
    %75 = arith.mulf %70, %74 : vector<8x8xf32>
    %cst_34 = arith.constant dense<0.000000e+00> : vector<8x8xf32>
    %76 = tpu.matmul %75, %60, %cst_34 {dimension_numbers = #tpu.dot_dimension_numbers<[1], [0], [0], [1], [0, 0, 1, 1], [], []>} : vector<8x8xf32>, vector<8x8xf32>, vector<8x8xf32> -> vector<8x8xf32>
    %77 = vector.extract_strided_slice %11 {offsets = [16, 0], sizes = [8, 32], strides = [1, 1]} : vector<32x32xf32> to vector<8x32xf32>
    %cst_35 = arith.constant dense<0.000000e+00> : vector<8x32xf32>
    %78 = tpu.matmul %76, %77, %cst_35 {dimension_numbers = #tpu.dot_dimension_numbers<[1], [0], [0], [1], [0, 0, 1, 1], [], []>} : vector<8x8xf32>, vector<8x32xf32>, vector<8x32xf32> -> vector<8x32xf32>
    %79 = arith.addf %57, %78 : vector<8x32xf32>
    %80 = vector.extract_strided_slice %3 {offsets = [0, 24], sizes = [8, 8], strides = [1, 1]} : vector<8x32xf32> to vector<8x8xf32>
    %81 = vector.extract_strided_slice %5 {offsets = [0, 24], sizes = [8, 8], strides = [1, 1]} : vector<8x32xf32> to vector<8x8xf32>
    %82 = vector.extract_strided_slice %7 {offsets = [0, 24], sizes = [8, 8], strides = [1, 1]} : vector<8x32xf32> to vector<8x8xf32>
    %cst_36 = arith.constant dense<0.000000e+00> : vector<8x8xf32>
    %83 = tpu.matmul %80, %81, %cst_36 {dimension_numbers = #tpu.dot_dimension_numbers<[1], [1], [0], [0], [0, 0, 1, 0], [], []>} : vector<8x8xf32>, vector<8x8xf32>, vector<8x8xf32> -> vector<8x8xf32>
    %cst_37 = arith.constant 5.65685415 : f32
    %84 = vector.broadcast %cst_37 : f32 to vector<8x8xf32>
    %85 = arith.mulf %83, %84 : vector<8x8xf32>
    %cst_38 = arith.constant -1.000000e+30 : f32
    %86 = vector.broadcast %cst_38 : f32 to vector<8x8xf32>
    %87 = arith.select %10, %85, %86 : vector<8x8xi1>, vector<8x8xf32>
    %cst_39 = arith.constant dense<0xFF800000> : vector<8xf32>
    %88 = vector.multi_reduction <maximumf>, %87, %cst_39 [0] : vector<8x8xf32> to vector<8xf32>
    %89 = vector.shape_cast %88 : vector<8xf32> to vector<1x8xf32>
    %90 = vector.broadcast %89 : vector<1x8xf32> to vector<8x8xf32>
    %91 = arith.subf %87, %90 : vector<8x8xf32>
    %92 = math.exp %91 : vector<8x8xf32>
    %cst_40 = arith.constant dense<0.000000e+00> : vector<8xf32>
    %93 = vector.multi_reduction <add>, %92, %cst_40 [0] : vector<8x8xf32> to vector<8xf32>
    %94 = vector.shape_cast %93 : vector<8xf32> to vector<1x8xf32>
    %95 = tpu.reciprocal %94 {approx = true} : vector<1x8xf32> -> vector<1x8xf32>
    %96 = vector.broadcast %95 : vector<1x8xf32> to vector<8x8xf32>
    %97 = arith.mulf %92, %96 : vector<8x8xf32>
    %cst_41 = arith.constant dense<0.000000e+00> : vector<8x8xf32>
    %98 = tpu.matmul %97, %82, %cst_41 {dimension_numbers = #tpu.dot_dimension_numbers<[1], [0], [0], [1], [0, 0, 1, 1], [], []>} : vector<8x8xf32>, vector<8x8xf32>, vector<8x8xf32> -> vector<8x8xf32>
    %99 = vector.extract_strided_slice %11 {offsets = [24, 0], sizes = [8, 32], strides = [1, 1]} : vector<32x32xf32> to vector<8x32xf32>
    %cst_42 = arith.constant dense<0.000000e+00> : vector<8x32xf32>
    %100 = tpu.matmul %98, %99, %cst_42 {dimension_numbers = #tpu.dot_dimension_numbers<[1], [0], [0], [1], [0, 0, 1, 1], [], []>} : vector<8x8xf32>, vector<8x32xf32>, vector<8x32xf32> -> vector<8x32xf32>
    %101 = arith.addf %79, %100 : vector<8x32xf32>
    %102 = vector.broadcast %12 : vector<1x32xf32> to vector<8x32xf32>
    %103 = arith.addf %101, %102 : vector<8x32xf32>
    %c0_43 = arith.constant 0 : index
    %c0_44 = arith.constant 0 : index
    %c0_45 = arith.constant 0 : index
    %104 = vector.load %arg7[%c0_43, %c0_44, %c0_45] : memref<1x8x32xf32, #tpu.memory_space<vmem>>, vector<1x8x32xf32>
    %105 = vector.shape_cast %104 : vector<1x8x32xf32> to vector<8x32xf32>
    %106 = vector.shape_cast %103 : vector<8x32xf32> to vector<1x8x32xf32>
    tpu.vector_store %arg7[%c0_43, %c0_44, %c0_45], %106 {strides = array<i32>} : memref<1x8x32xf32, #tpu.memory_space<vmem>>, vector<1x8x32xf32>,
    return
  }
  func.func @transform_0(%arg0: i32) -> (i32, i32, i32) {
    %c0_i32 = arith.constant 0 : i32
    %c0_i32_0 = arith.constant 0 : i32
    %c0_i32_1 = arith.constant 0 : i32
    return %arg0, %c0_i32, %c0_i32_0 : i32, i32, i32
  }
  func.func @transform_1(%arg0: i32) -> (i32, i32) {
    %c0_i32 = arith.constant 0 : i32
    %c0_i32_0 = arith.constant 0 : i32
    %c0_i32_1 = arith.constant 0 : i32
    return %c0_i32, %c0_i32_0 : i32, i32
  }
  func.func @transform_2(%arg0: i32) -> (i32, i32) {
    %c0_i32 = arith.constant 0 : i32
    %c0_i32_0 = arith.constant 0 : i32
    %c0_i32_1 = arith.constant 0 : i32
    return %c0_i32, %c0_i32_0 : i32, i32
  }
  func.func @transform_3(%arg0: i32) -> (i32, i32) {
    %c0_i32 = arith.constant 0 : i32
    %c0_i32_0 = arith.constant 0 : i32
    %c0_i32_1 = arith.constant 0 : i32
    return %c0_i32, %c0_i32_0 : i32, i32
  }
  func.func @transform_4(%arg0: i32) -> (i32, i32) {
    %c0_i32 = arith.constant 0 : i32
    %c0_i32_0 = arith.constant 0 : i32
    %c0_i32_1 = arith.constant 0 : i32
    return %c0_i32, %c0_i32_0 : i32, i32
  }
  func.func @transform_5(%arg0: i32) -> (i32, i32) {
    %c0_i32 = arith.constant 0 : i32
    %c0_i32_0 = arith.constant 0 : i32
    %c0_i32_1 = arith.constant 0 : i32
    return %c0_i32, %c0_i32_0 : i32, i32
  }
  func.func @transform_6(%arg0: i32) -> (i32, i32, i32) {
    %c0_i32 = arith.constant 0 : i32
    %c0_i32_0 = arith.constant 0 : i32
    %c0_i32_1 = arith.constant 0 : i32
    return %arg0, %c0_i32, %c0_i32_0 : i32, i32, i32
  }
}

</mosaic_0001>

<bundles_post_ra>
// kernel: tpu_custom_call.1
= control target key start
LH: loop header
LB: loop body
LE: loop exit
PB: predicated region body
PF: predicated region fallthrough
CT: control target
= control target key end

     0   :  { %s1583_s0 = inlined_call_operand.hbm [shape: f32[2,8,32], index: 0, kind: input, shape index: {}]   ;;  %s1584_s1 = inlined_call_operand.hbm [shape: f32[32,32], index: 1, kind: input, shape index: {}]   ;;  %s1585_s2 = inlined_call_operand.hbm [shape: f32[32,32], index: 2, kind: input, shape index: {}]   ;;  %s1586_s3 = inlined_call_operand.hbm [shape: f32[32,32], index: 3, kind: input, shape index: {}]   ;;  %s1587_s4 = inlined_call_operand.hbm [shape: f32[32,32], index: 4, kind: input, shape index: {}]   ;;  %s1588_s5 = inlined_call_operand.vmem [shape: f32[1,32], index: 5, kind: input, shape index: {}]   ;;  %s1589_s6 = inlined_call_operand.hbm [shape: f32[2,8,32], index: 6, kind: output, shape index: {}]  }
   0x1   :  { %1590 = sst [smem:[#allocation16_spill]] %s1584_s1 }
   0x2   :  { %11 = vsyncpa [#allocation3], 0 }
   0x3   :  { %13 = vsyncpa [#allocation3 + $0x1], 0 }
   0x4   :  { %14 = vsyncpa [#allocation6], 0 }
   0x5   :  { %15 = vsyncpa [#allocation9], 0 }
   0x6   :  { %16 = vsyncpa [#allocation4], 0 }
   0x7   :  { %18 = vsyncpa [#allocation4 + $0x1], 0  ;;  %s1360_s21 = smov 0   ;;  %s1362_s22 = smov 0  }
   0x8   :  { %s1364_s23 = smov 0   ;;  %s1366_s24 = smov 0  }
   0x9 LB: > { %s1591_s1 = sld [smem:[#allocation16_spill]]  ;;  %s1384_s28 = sadd.s32 4294967295, %s1314_s24   ;;  %s1314_s24 = sphi %s1366_s24, %s1603_s24   ;;  %s1310_s23 = sphi %s1364_s23, %s1602_s23   ;;  %s1306_s22 = sphi %s1362_s22, %s1601_s22   ;;  %s1302_s21 = sphi %s1360_s21, %s1600_s21  }
   0xa   : > { %p943_p0 = scmp.ge.s32.totalorder %s1314_s24, 1  ;;  %p45_p1 = scmp.eq.s32.totalorder %s1384_s28, 0 }
   0xb   : > { %p186_p2 = scmp.lt.s32.totalorder %s1314_s24, 3  ;;  %s1316_s30 = smov [#allocation5]  }
   0xc   : > { %s199_s7 = sshll.u32 %s1316_s30, 4  ;;  %s225_s10 = sshll.u32 %s1586_s3, 4  ;;  %s200_s7 = int_to_ptr.vmem [resolvable:$true] %s199_s7  ;;  %s226_s10 = int_to_ptr.hbm [resolvable:$true] %s225_s10 }
   0xd   : > { %p1389_p3 = pnand %p943_p0, %p186_p2  ;;  %s211_s14 = sshll.u32 %s1585_s2, 4  ;;  %s212_s14 = int_to_ptr.hbm [resolvable:$true] %s211_s14 }
   0xe   : > { %s1317_s15 = smov [#allocation8]   ;;  %s1318_s17 = smov 128  }
   0xf   : > { %s197_s27 = sshll.u32 %s1591_s1, 4  ;;  %p1001_p4 = pneg %p1389_p3  ;;  %s198_s27 = int_to_ptr.hbm [resolvable:$true] %s197_s27 }
  0x10   : > { %s227_s16 = sshll.u32 %s1317_s15, 4  ;;  %s1319_s18 = smov 8   ;;  %s228_s16 = int_to_ptr.vmem [resolvable:$true] %s227_s16 }
  0x11   : > { %p1401_p6 = pnand %p1001_p4, %p45_p1  ;;  %s239_s25 = sshll.u32 %s1587_s4, 4  ;;  %s240_s25 = int_to_ptr.hbm [resolvable:$true] %s239_s25 }
  0x12   : > { %s1320_s26 = smov [#allocation7]   ;;  %s942_s8 = sadd.s32 4294967294, %s1314_s24  }
  0x13   : > { %1004 = dma.hbm_to_vmem [thread:$0]  (!%p1401_p6), %s198_s27, 512, %s200_s7, [#allocation6], %s1318_s17, %s1318_s17, %s1319_s18  }
  0x14   : > { %1010 = dma.hbm_to_vmem [thread:$0]  (!%p1401_p6), %s226_s10, 512, %s228_s16, [#allocation9], %s1318_s17, %s1318_s17, %s1319_s18  }
  0x15   : > { %s213_s30 = sshll.u32 %s1320_s26, 4  ;;  %s1321_s27 = smov [#allocation10]   ;;  %s214_s30 = int_to_ptr.vmem [resolvable:$true] %s213_s30 }
  0x16   : > { %1007 = dma.hbm_to_vmem [thread:$0]  (!%p1401_p6), %s212_s14, 512, %s214_s30, [#allocation6], %s1318_s17, %s1318_s17, %s1319_s18  }
  0x17   : > { %s241_s7 = sshll.u32 %s1321_s27, 4  ;;  %s1421_s9 = sadd.s32 1, %s1314_s24   ;;  %s242_s7 = int_to_ptr.vmem [resolvable:$true] %s241_s7 }
  0x18   : > { %1013 = dma.hbm_to_vmem [thread:$0]  (!%p1401_p6), %s240_s25, 512, %s242_s7, [#allocation9], %s1318_s17, %s1318_s17, %s1319_s18  }
  0x19   : > { %s28_s10 = ssub.s32 %s1314_s24, %s1421_s9  ;;  %s31_s12 = sadd.s32 1, %s1310_s23 }
  0x1a   : > { %p29_p7 = scmp.eq.s32.totalorder %s28_s10, 0  ;;  %p38_p8 = scmp.ne.s32.totalorder %s1310_s23, %s1306_s22 }
  0x1b   : > { %p39_p9 = scmp.eq.s32.totalorder %s1314_s24, 0  ;;  %p44_p10 = scmp.ne.s32.totalorder %s1306_s22, %s1302_s21 }
  0x1c   : > { %s1432_s13 = scalar_select %p29_p7, %s1310_s23, %s31_s12  }
  0x1d   : > { %p1434_p11 = por %p39_p9, %p38_p8  ;;  %p1440_p12 = por %p45_p1, %p44_p10 }
  0x1e   : > { %p173_p13 = scmp.eq.s32.totalorder %s1384_s28, 1  ;;  %p179_p0 = scmp.eq.s32.totalorder %s942_s8, 1 }
  0x1f   : > { %p1026_p2 = scmp.lt.s32.totalorder %s1314_s24, 2  ;;  %s258_s15 = sand.u32 1, %s1310_s23  }
  0x20   : > { %p1447_p4 = por %p173_p13, %p38_p8  ;;  %p1451_p6 = por %p179_p0, %p44_p10 }
  0x21   : > { %s949_s18 = sshll.u32 %s258_s15, 3  ;;  %s950_s19 = sshll.u32 %s1314_s24, 3 }
  0x22   : > { %s266_s26 = scalar_lea.hbm %s1583_s0, %s950_s19  ;;  %s262_s30 = scalar_lea.vmem [#allocation2], %s949_s18 }
  0x23   : > { %s270_s27 = sshll.u32 %s262_s30, 4  ;;  %s268_s7 = sshll.u32 %s266_s26, 4  ;;  %s271_s27 = int_to_ptr.vmem [resolvable:$true] %s270_s27  ;;  %s269_s7 = int_to_ptr.hbm [resolvable:$true] %s268_s7 }
  0x24   : > { %p1461_p7 = pnand %p1026_p2, %p1434_p11  ;;  %s259_s10 = scalar_lea.sflag [#allocation3], %s258_s15 }
  0x25   : > { %s1210_s12 = sshra.s32 %s269_s7, 4  ;;  %s1217_s20 = scalar_lea.hbm %s1583_s0, 16  ;;  %s1211_s12 = int_to_ptr.hbm [resolvable:$true] %s1210_s12 }
  0x26   : > { %s1212_s1 = scalar_lea.hbm %s1211_s12, 8  ;;  %p1214_p9 = pneg %p1461_p7 }
  0x27   : > { %p1213_p8 = scmp.ne.s32.totalorder %s1211_s12, %s1212_s1  ;;  %p1218_p11 = scmp.lt.s32.totalorder %s1211_s12, %s1583_s0 }
  0x28   : > { %p1219_p0 = scmp.lt.s32.totalorder %s1217_s20, %s1212_s1 }
  0x29   : > { %p1215_p10 = pnand %p1214_p9, %p1213_p8 }
  0x2a   : > { %p1220_p2 = por %p1219_p0, %p1218_p11 }
  0x2b   : > { %p1216_p13 = pneg %p1215_p10 }
  0x2d   : > { %p1221_p5 = pnand %p1220_p2, %p1216_p13 }
  0x2f   : > { %1224 = shalt.err (!%p1221_p5)
}
  0x30   : > { %1017 = dma.hbm_to_vmem [thread:$0]  (!%p1461_p7), %s269_s7, 128, %s271_s27, %s259_s10  }
  0x31   : > { %279 = sbr.rel (%p1389_p3) target bundleno = 959 (0x3bf), region = 44  ;;  %s1478_s15 = sand.u32 (!%p1389_p3), 1, %s1306_s22  }
  0x32   : > { %s952_s26 = sshll.u32 (!%p1389_p3), %s1478_s15, 3  ;;  %s282_s30 = scalar_lea.sflag (!%p1389_p3), [#allocation3], %s1478_s15 }
  0x33   : > { %s285_s1 = scalar_lea.vmem (!%p1389_p3), [#allocation2], %s952_s26 }
  0x36   : > { %1285 = dma.done.wait (%p1440_p12), %s282_s30, 128  }
  0x37   : > { %1287 = vsyncadd (%p1440_p12), %s282_s30, 4294967168 }
  0x38   : > { %1289 = dma.done.wait (%p45_p1), [#allocation6], 1024  }
  0x39   : > { %1291 = vsyncadd (%p45_p1), [#allocation6], 4294966272 }
  0x3a   : > { %1293 = dma.done.wait (%p45_p1), [#allocation9], 1024  }
  0x3b   : > { %1295 = vsyncadd (%p45_p1), [#allocation9], 4294966272  ;;  %v339_v0 = vld [vmem:[#allocation5 + $0x18] sm:$0xff]  ;;  %v338_v2 = vld [vmem:[#allocation5 + $0x10] sm:$0xff]  ;;  %vm340_vm0 = vcmask 261120   ;;  %vm422_vm1 = vcmask 64512   ;;  %v412_v18 = vlaneseq }
  0x3c   : > { %v367_v1 = vld [vmem:[#allocation7 + $0x18] sm:$0xff]  ;;  %356 = vmatpush.msra.mxu0 %v339_v0  ;;  %v366_v3 = vld [vmem:[#allocation7 + $0x10] sm:$0xff]  ;;  %v337_v4 = vld [vmem:[#allocation5 + $0x8] sm:$0xff]  ;;  %s1322_s29 = smov 112   ;;  %s1323_s11 = smov 120  }
  0x3d   : > { %380 = vmatpush.msra.mxu1 %v367_v1  ;;  %v365_v5 = vld [vmem:[#allocation7 + $0x8] sm:$0xff]  ;;  %v336_v6 = vld [vmem:[#allocation5] sm:$0xff]  ;;  %v335_v8 = vld [vmem:[%s285_s1] sm:$0xff]  ;;  %s1324_s27 = smov 104   ;;  %v1507_v20 = vshrl.u32 %v412_v18, 7  ;;  %v1509_v21 = vand.u32 127, %v412_v18 }
  0x3e   : > { %357 = vmatpush.msra.mxu0 %v338_v2  ;;  %v364_v7 = vld [vmem:[#allocation7] sm:$0xff]  ;;  %v391_v9 = vld [vmem:[#allocation8 + $0x18] sm:$0xff]  ;;  %v390_v10 = vld [vmem:[#allocation8 + $0x10] sm:$0xff]  ;;  %s978_s7 = sshll.u32 %s1384_s28, 3  ;;  %s334_s20 = scalar_lea.vmem [#allocation11], %s952_s26 }
  0x3f   : > { %381 = vmatpush.msra.mxu1 %v366_v3  ;;  %404 = vmatpush.msra.mxu2 %v391_v9  ;;  %v389_v11 = vld [vmem:[#allocation8 + $0x8] sm:$0xff]  ;;  %v388_v12 = vld [vmem:[#allocation8] sm:$0xff]  ;;  %vm416_vm2 = vcmp.le.s32.totalorder %v1509_v21, %v1507_v20  ;;  %s829_s12 = scalar_lea.hbm %s1589_s6, %s978_s7  ;;  %s831_s25 = sshll.u32 %s334_s20, 4  ;;  %s832_s25 = int_to_ptr.vmem [resolvable:$true] %s831_s25 }
  0x40   : > { %358 = vmatpush.msra.mxu0 %v337_v4  ;;  %v417_v28 = vld [vmem:[#allocation10] sm:$0xff]  ;;  %s833_s14 = sshll.u32 %s829_s12, 4  ;;  %s819_s28 = scalar_lea.sflag [#allocation4], %s1478_s15  ;;  %s834_s14 = int_to_ptr.hbm [resolvable:$true] %s833_s14 }
  0x41   : > { %382 = vmatpush.msra.mxu1 %v365_v5  ;;  %405 = vmatpush.msra.mxu2 %v390_v10  ;;  %s1254_s30 = sshra.s32 %s834_s14, 4  ;;  %s1260_s26 = scalar_lea.hbm %s1589_s6, 16  ;;  %s1255_s30 = int_to_ptr.hbm [resolvable:$true] %s1254_s30 }
  0x42   : > { %359 = vmatpush.msra.mxu0 %v336_v6  ;;  %s1256_s1 = scalar_lea.hbm %s1255_s30, 8  ;;  %p1261_p12 = scmp.lt.s32.totalorder %s1255_s30, %s1589_s6 }
  0x43   : > { %383 = vmatpush.msra.mxu1 %v364_v7  ;;  %958 = vmatmul.msk.f32.vlgmr.msra.gmra.mxu0 %vm340_vm0, %v335_v8  ;;  %p1257_p1 = scmp.ne.s32.totalorder %s1255_s30, %s1256_s1  ;;  %p1262_p7 = scmp.lt.s32.totalorder %s1260_s26, %s1256_s1 }
  0x44   : > { %959 = vmatmul.msk.f32.vlgmr.msra.gmra.mxu1 %vm340_vm0, %v335_v8  ;;  %406 = vmatpush.msra.mxu2 %v389_v11 }
  0x45   : > { %p1258_p3 = pnand %p1257_p1, %p1447_p4  ;;  %p1263_p8 = por %p1262_p7, %p1261_p12 }
  0x46   : > { %407 = vmatpush.msra.mxu2 %v388_v12 }
  0x47   : > { %960 = vmatmul.msk.f32.vlgmr.msra.gmra.mxu2 %vm340_vm0, %v335_v8  ;;  %p1259_p5 = pneg %p1258_p3 }
  0x49   : > { %p1264_p9 = pnand %p1263_p8, %p1259_p5 }
  0xc0   : > { %v361_v13 = vpop.f32.mrf.mxu0 }
  0xc1   : > { %v385_v14 = vpop.f32.mrf.mxu1  ;;  %615 = vrot.lane.b32.xlu2 %v361_v13, %s1322_s29 }
  0xc2   : > { %617 = vrot.lane.b32.xlu1 %v385_v14, %s1322_s29  ;;  %495 = vrot.lane.b32.xlu0 %v385_v14, %s1323_s11 }
  0xc3   : > { %961 = vmatpush.xpose.msk.msra.mxu3 %vm422_vm1, %v385_v14 }
  0xc6   : > { %962 = vmatmul.msk.f32.vlgmr.msra.gmra.mxu3 %vm422_vm1, %v361_v13 }
  0xc9   : > { %714 = vrot.lane.b32.xlu2 %v361_v13, %s1324_s27 }
  0xca   : > { %716 = vrot.lane.b32.xlu1 %v385_v14, %s1324_s27  ;;  %493 = vrot.lane.b32.xlu0 %v361_v13, %s1323_s11  ;;  %v409_v27 = vpop.f32.mrf.mxu2 }
  0xcb   : > { %488 = vmatpush.msrb.mxu3 %v409_v27 }
  0xcd   : > { %610 = vmatpush.msra.mxu3 %v417_v28 }
  0xd1   : > { %763 = vrot.lane.b32.xlu2 %v409_v27, %s1324_s27 }
  0xd2   : > { %543 = vrot.lane.b32.xlu0 %v409_v27, %s1323_s11  ;;  %664 = vrot.lane.b32.xlu1 %v409_v27, %s1322_s29 }
 0x11b   : > { %v616_v19 = vpop.permute.xlu2 %615 }
 0x123   : > { %v715_v47 = vpop.permute.xlu2 %714 }
 0x12b   : > { %v764_v48 = vpop.permute.xlu2 %763 }
 0x134   : > { %v618_v15 = vpop.permute.xlu1 %617  ;;  %v496_v16 = vpop.permute.xlu0 %495 }
 0x135   : > { %964 = vmatpush.xpose.msk.msrb.mxu0 %vm422_vm1, %v496_v16 }
 0x139   : > { %969 = vmatpush.xpose.msk.msra.mxu0 %vm422_vm1, %v618_v15 }
 0x13c   : > { %v494_v17 = vpop.permute.xlu0 %493  ;;  %v717_v46 = vpop.permute.xlu1 %716 }
 0x13d   : > { %965 = vmatmul.msk.f32.vlgmr.msrb.gmra.mxu0 %vm422_vm1, %v494_v17 }
 0x13e   : > { %784 = vmatpush.msrb.mxu0 %v764_v48 }
 0x144   : > { %v544_v3 = vpop.permute.xlu0 %543  ;;  %v665_v6 = vpop.permute.xlu1 %664 }
 0x145   : > { %970 = vmatmul.msk.f32.vlgmr.msra.gmra.mxu0 %vm422_vm1, %v616_v19  ;;  %564 = vmatpush.msrb.mxu1 %v544_v3 }
 0x147   : > { %685 = vmatpush.msra.mxu1 %v665_v6 }
 0x149   : > { %v446_v22 = vpop.f32.mrf.mxu3 }
 0x14a   : > { %v449_v23 = vmul.f32 5.656854, %v446_v22 }
 0x14c   : > { %v450_v24 = vsel %vm416_vm2, %v449_v23, -1e+30 }
 0x14d   : > { %v451_v25 = vsel %vm422_vm1, %v450_v24, -inf }
 0x14e   : > { %v452_v26 = vrot.slane %v451_v25, 4 }
 0x150   : > { %v453_v29 = vmax.f32 %v451_v25, %v452_v26 }
 0x152   : > { %v454_v30 = vrot.slane %v453_v29, 2 }
 0x154   : > { %v455_v31 = vmax.f32 %v453_v29, %v454_v30 }
 0x156   : > { %v456_v32 = vrot.slane %v455_v31, 1 }
 0x158   : > { %v457_v33 = vmax.f32 %v455_v31, %v456_v32 }
 0x15a   : > { %v458_v34 = vsub.f32 %v450_v24, %v457_v33 }
 0x15c   : > { %v459_v35 = vmul.f32 1.442695, %v458_v34  ;;  %v418_v34 = vld [vmem:[#allocation10 + $0x8] sm:$0xff] }
 0x15d   : > { %587 = vmatpush.msrb.mxu2 %v418_v34 }
 0x15e   : > { %1074 = vpow2.f32 %v459_v35  ;;  %v419_v35 = vld [vmem:[#allocation10 + $0x10] sm:$0xff] }
 0x15f   : > { %708 = vmatpush.msra.mxu2 %v419_v35 }
 0x164   : > { %v1075_v36 = vpop.eup %1074 }
 0x165   : > { %v461_v37 = vsel %vm422_vm1, %v1075_v36, 0.0 }
 0x166   : > { %v462_v38 = vrot.slane %v461_v37, 4 }
 0x168   : > { %v463_v39 = vadd.f32 %v462_v38, %v461_v37 }
 0x16a   : > { %v464_v40 = vrot.slane %v463_v39, 2 }
 0x16c   : > { %v465_v41 = vadd.f32 %v464_v40, %v463_v39 }
 0x16e   : > { %v466_v42 = vrot.slane %v465_v41, 1 }
 0x170   : > { %v467_v43 = vadd.f32 %v466_v42, %v465_v41 }
 0x172   : > { %1076 = vrcp.f32 %v467_v43 }
 0x178   : > { %v1077_v44 = vpop.eup %1076 }
 0x179   : > { %v469_v45 = vmul.f32 %v1077_v44, %v1075_v36 }
 0x17b   : > { %963 = vmatmul.msk.f32.vlgmr.msrb.gmra.mxu3 %vm422_vm1, %v469_v45 }
 0x17c   : > { %973 = vmatpush.xpose.msk.msrb.mxu3 %vm422_vm1, %v717_v46 }
 0x1ba   : > { %v518_v49 = vpop.f32.mrf.mxu0 }
 0x1bb   : > { %v521_v50 = vmul.f32 5.656854, %v518_v49 }
 0x1bd   : > { %v522_v51 = vsel %vm416_vm2, %v521_v50, -1e+30 }
 0x1be   : > { %v523_v52 = vsel %vm422_vm1, %v522_v51, -inf }
 0x1bf   : > { %v524_v53 = vrot.slane %v523_v52, 4 }
 0x1c1   : > { %v525_v54 = vmax.f32 %v523_v52, %v524_v53 }
 0x1c2   : > { %v640_v55 = vpop.f32.mrf.mxu0 }
 0x1c3   : > { %v526_v56 = vrot.slane %v525_v54, 2  ;;  %v643_v57 = vmul.f32 5.656854, %v640_v55 }
 0x1c5   : > { %v527_v58 = vmax.f32 %v525_v54, %v526_v56  ;;  %v644_v59 = vsel %vm416_vm2, %v643_v57, -1e+30 }
 0x1c6   : > { %v645_v60 = vsel %vm422_vm1, %v644_v59, -inf }
 0x1c7   : > { %v528_v61 = vrot.slane %v527_v58, 1  ;;  %v646_v62 = vrot.slane %v645_v60, 4 }
 0x1c9   : > { %v529_v63 = vmax.f32 %v527_v58, %v528_v61  ;;  %v647_v0 = vmax.f32 %v645_v60, %v646_v62 }
 0x1cb   : > { %v530_v1 = vsub.f32 %v522_v51, %v529_v63  ;;  %v648_v2 = vrot.slane %v647_v0, 2 }
 0x1cd   : > { %v531_v4 = vmul.f32 1.442695, %v530_v1  ;;  %v649_v5 = vmax.f32 %v647_v0, %v648_v2  ;;  %v1073_v1 = vld [vmem:[%s1588_s5] ss:$0 sm:$0xff] }
 0x1cf   : > { %1078 = vpow2.f32 %v531_v4  ;;  %v650_v7 = vrot.slane %v649_v5, 1 }
 0x1d1   : > { %v651_v8 = vmax.f32 %v649_v5, %v650_v7 }
 0x1d3   : > { %v652_v9 = vsub.f32 %v644_v59, %v651_v8  ;;  %v420_v59 = vld [vmem:[#allocation10 + $0x18] sm:$0xff] }
 0x1d5   : > { %v1079_v10 = vpop.eup %1078  ;;  %v653_v11 = vmul.f32 1.442695, %v652_v9 }
 0x1d6   : > { %v533_v12 = vsel %vm422_vm1, %v1079_v10, 0.0 }
 0x1d7   : > { %v534_v13 = vrot.slane %v533_v12, 4  ;;  %1080 = vpow2.f32 %v653_v11 }
 0x1d9   : > { %v535_v14 = vadd.f32 %v534_v13, %v533_v12 }
 0x1db   : > { %v536_v15 = vrot.slane %v535_v14, 2 }
 0x1dd   : > { %v1081_v16 = vpop.eup %1080  ;;  %v537_v17 = vadd.f32 %v536_v15, %v535_v14 }
 0x1de   : > { %v655_v18 = vsel %vm422_vm1, %v1081_v16, 0.0 }
 0x1df   : > { %v538_v19 = vrot.slane %v537_v17, 1  ;;  %v656_v22 = vrot.slane %v655_v18, 4 }
 0x1e1   : > { %v657_v23 = vadd.f32 %v656_v22, %v655_v18  ;;  %v539_v24 = vadd.f32 %v538_v19, %v537_v17 }
 0x1e3   : > { %v658_v25 = vrot.slane %v657_v23, 2  ;;  %1082 = vrcp.f32 %v539_v24 }
 0x1e5   : > { %v659_v26 = vadd.f32 %v658_v25, %v657_v23 }
 0x1e7   : > { %v660_v27 = vrot.slane %v659_v26, 1 }
 0x1e9   : > { %v1083_v28 = vpop.eup %1082  ;;  %v661_v29 = vadd.f32 %v660_v27, %v659_v26 }
 0x1ea   : > { %v541_v30 = vmul.f32 %v1083_v28, %v1079_v10 }
 0x1eb   : > { %1084 = vrcp.f32 %v661_v29 }
 0x1ec   : > { %966 = vmatmul.msk.f32.vlgmr.msrb.gmra.mxu1 %vm422_vm1, %v541_v30 }
 0x1ed   : > { %807 = vmatpush.msrb.mxu1 %v420_v59 }
 0x1f1   : > { %v1085_v31 = vpop.eup %1084 }
 0x1f2   : > { %v663_v32 = vmul.f32 %v1085_v31, %v1081_v16 }
 0x1f4   : > { %971 = vmatmul.msk.f32.vlgmr.msra.gmra.mxu1 %vm422_vm1, %v663_v32 }
 0x1fe   : > { %v490_v33 = vpop.f32.mrf.mxu3 }
 0x1ff   : > { %968 = vmatmul.msk.f32.vlgmr.msra.gmra.mxu3 %vm422_vm1, %v490_v33 }
 0x207   : > { %974 = vmatmul.msk.f32.vlgmr.msrb.gmra.mxu3 %vm422_vm1, %v715_v47 }
 0x269   : > { %v566_v36 = vpop.f32.mrf.mxu1 }
 0x26a   : > { %967 = vmatmul.msk.f32.vlgmr.msrb.gmra.mxu2 %vm422_vm1, %v566_v36 }
 0x271   : > { %v687_v37 = vpop.f32.mrf.mxu1 }
 0x272   : > { %972 = vmatmul.msk.f32.vlgmr.msra.gmra.mxu2 %vm422_vm1, %v687_v37 }
 0x282   : > { %v612_v38 = vpop.f32.mrf.mxu3 }
 0x28a   : > { %v739_v39 = vpop.f32.mrf.mxu3 }
 0x28b   : > { %v742_v40 = vmul.f32 5.656854, %v739_v39 }
 0x28d   : > { %v743_v41 = vsel %vm416_vm2, %v742_v40, -1e+30 }
 0x28e   : > { %v744_v42 = vsel %vm422_vm1, %v743_v41, -inf }
 0x28f   : > { %v745_v43 = vrot.slane %v744_v42, 4 }
 0x291   : > { %v746_v44 = vmax.f32 %v744_v42, %v745_v43 }
 0x293   : > { %v747_v45 = vrot.slane %v746_v44, 2 }
 0x295   : > { %v748_v46 = vmax.f32 %v746_v44, %v747_v45 }
 0x297   : > { %v749_v47 = vrot.slane %v748_v46, 1 }
 0x299   : > { %v750_v48 = vmax.f32 %v748_v46, %v749_v47 }
 0x29b   : > { %v751_v49 = vsub.f32 %v743_v41, %v750_v48 }
 0x29d   : > { %v752_v50 = vmul.f32 1.442695, %v751_v49 }
 0x29f   : > { %1086 = vpow2.f32 %v752_v50 }
 0x2a5   : > { %v1087_v51 = vpop.eup %1086 }
 0x2a6   : > { %v754_v52 = vsel %vm422_vm1, %v1087_v51, 0.0 }
 0x2a7   : > { %v755_v53 = vrot.slane %v754_v52, 4 }
 0x2a9   : > { %v756_v54 = vadd.f32 %v755_v53, %v754_v52 }
 0x2ab   : > { %v757_v55 = vrot.slane %v756_v54, 2 }
 0x2ad   : > { %v758_v20 = vadd.f32 %v757_v55, %v756_v54 }
 0x2af   : > { %v759_v21 = vrot.slane %v758_v20, 1 }
 0x2b1   : > { %v760_v56 = vadd.f32 %v759_v21, %v758_v20 }
 0x2b3   : > { %1088 = vrcp.f32 %v760_v56 }
 0x2b9   : > { %v1089_v57 = vpop.eup %1088 }
 0x2ba   : > { %v762_v58 = vmul.f32 %v1089_v57, %v1087_v51 }
 0x2bc   : > { %975 = vmatmul.msk.f32.vlgmr.msrb.gmra.mxu0 %vm422_vm1, %v762_v58 }
 0x2ed   : > { %v589_v61 = vpop.f32.mrf.mxu2 }
 0x2ee   : > { %v613_v63 = vadd.f32 %v612_v38, %v589_v61 }
 0x2f5   : > { %v710_v62 = vpop.f32.mrf.mxu2 }
 0x2f6   : > { %v713_v0 = vadd.f32 %v710_v62, %v613_v63 }
 0x339   : > { %v786_v60 = vpop.f32.mrf.mxu0 }
 0x33a   : > { %976 = vmatmul.msk.f32.vlgmr.msrb.gmra.mxu1 %vm422_vm1, %v786_v60 }
 0x3b7   : > { %v809_v2 = vpop.f32.mrf.mxu1 }
 0x3b8   : > { %v812_v3 = vadd.f32 %v809_v2, %v713_v0 }
 0x3ba   : > { %v816_v4 = vadd.f32 %v1073_v1, %v812_v3 }
 0x3bc   : > { %817 = vst.msk [vmem:[%s334_s20] sm:$0xff] %vm340_vm0, %v816_v4 }
 0x3bd   : > { %1267 = shalt.err (!%p1264_p9)
}
 0x3be   : > { %999 = dma.vmem_to_hbm [thread:$0]  (%p1447_p4), %s832_s25, 128, %s834_s14, %s819_s28  }
 0x3bf PF: > { %s845_s15 = sand.u32 1, %s1302_s21   ;;  %p1599_p10 = scmp.ge.s32.totalorder %s1314_s24, 2 }
 0x3c0   : > { %s846_s8 = scalar_lea.sflag [#allocation4], %s845_s15 }
 0x3c1   : > { %p1019_p13 = pnand %p1599_p10, %p1451_p6 }
 0x3c3   : > { %p1020_p11 = pneg %p1019_p13 }
 0x3c5   : > { %1297 = dma.done.wait (%p1020_p11), %s846_s8, 128  }
 0x3c6   : > { %1299 = vsyncadd (%p1020_p11), %s846_s8, 4294967168  ;;  %p21_p0 = scmp.ge.s32.totalorder %s1421_s9, 4   ;;  %s1600_s21 = smov %s1306_s22 }
 0x3c7   : > { %s1601_s22 = smov %s1310_s23  ;;  %s1602_s23 = smov %s1432_s13 }
 0x3c8   : > { %s1603_s24 = smov %s1421_s9  ;;  %23 = sbr.rel (!%p21_p0) target bundleno = 9 (0x9), region = 105 }
 0x3cd   :  { %852 = vsyncpa [#allocation3], 1 }
 0x3ce   :  { %854 = vsyncpa [#allocation3 + $0x1], 1 }
 0x3cf   :  { %855 = vsyncpa [#allocation6], 1 }
 0x3d0   :  { %856 = vsyncpa [#allocation9], 1 }
 0x3d1   :  { %857 = vsyncpa [#allocation4], 1 }
 0x3d2   :  { %859 = vsyncpa [#allocation4 + $0x1], 1 }

</bundles_post_ra>
